<compile_context>
chip_gen: v7x
topology: tpu7x:2x2x1
jax: 0.10.0
libtpu: 0.0.40
codegen_flags: <defaults>
</compile_context>

<pallas_src>
import numpy as np
import jax
import jax.numpy as jnp
from jax.experimental import pallas as pl
from jax.experimental.pallas import tpu as pltpu


_LUM_TBL = np.array(
    [[16, 11, 10, 16, 24, 40, 51, 61],
     [12, 12, 14, 19, 26, 58, 60, 55],
     [14, 13, 16, 24, 40, 57, 69, 56],
     [14, 17, 22, 29, 51, 87, 80, 62],
     [18, 22, 37, 56, 68, 109, 103, 77],
     [24, 35, 55, 64, 81, 104, 113, 92],
     [49, 64, 78, 87, 103, 121, 120, 101],
     [72, 92, 95, 98, 112, 100, 103, 99]], dtype=np.float32)

_CHR_TBL = np.array(
    [[17, 18, 24, 47, 99, 99, 99, 99],
     [18, 21, 26, 66, 99, 99, 99, 99],
     [24, 26, 56, 99, 99, 99, 99, 99],
     [47, 66, 99, 99, 99, 99, 99, 99],
     [99, 99, 99, 99, 99, 99, 99, 99],
     [99, 99, 99, 99, 99, 99, 99, 99],
     [99, 99, 99, 99, 99, 99, 99, 99],
     [99, 99, 99, 99, 99, 99, 99, 99]], dtype=np.float32)


def _round_up(x, m):
    return (x + m - 1) // m * m


def _dct_coeff():
    coff = np.zeros((8, 8), dtype=np.float32)
    coff[0, :] = np.sqrt(1.0 / 8.0)
    for i in range(1, 8):
        for j in range(8):
            coff[i, j] = np.cos(np.pi * i * (2 * j + 1) / 16.0) * np.sqrt(2.0 / 8.0)
    return coff


def _quant_core_tables(scale_factor, tw):
    """8x8-periodic quant cores, stacked [luma8; chroma8] -> shape (16, tw)."""
    lum8 = np.clip(np.round(_LUM_TBL * scale_factor), 1, None).astype(np.float32)
    chr8 = np.clip(np.round(_CHR_TBL * scale_factor), 1, None).astype(np.float32)
    lum = np.tile(lum8, (1, tw // 8))
    chr_ = np.tile(chr8, (1, tw // 8))
    q = np.concatenate([lum, chr_], axis=0).astype(np.float32)        # (16, tw)
    invq = (1.0 / q).astype(np.float32)
    return q, invq


def _replicate_even(t, axis, parity=None):
    """Copy even-indexed rows/cols into the following odd index (JPEG subsample).

    roll + parity select keeps the data in its native (8,128) layout; the roll
    lands in the XLU slot, the select in the VPU (no lane-splitting reshapes).
    `parity` may be precomputed and shared across calls (hoisted per axis).
    """
    if parity is None:
        parity = (jax.lax.broadcasted_iota(jnp.int32, t.shape, axis) & 1) == 1
    rolled = pltpu.roll(t, shift=1, axis=axis)            # out[i] = t[i-1]
    return jnp.where(parity, rolled, t)


def _make_jpeg_kernel(subsample, TH, TW):
    half = 255.0 / 2.0
    n_h = TH // 8

    def kernel(x_ref, dh_ref, dw_ref, q_ref, invq_ref, o_ref):
        # ---- clamp to [-1, 1], rescale to [0, 255] -------------------------
        r = (jnp.clip(x_ref[0, 0, :, :], -1.0, 1.0) + 1.0) * half
        g = (jnp.clip(x_ref[0, 1, :, :], -1.0, 1.0) + 1.0) * half
        b = (jnp.clip(x_ref[0, 2, :, :], -1.0, 1.0) + 1.0) * half

        # ---- RGB -> YUV (pointwise) ----------------------------------------
        y = 0.299 * r + 0.587 * g + 0.114 * b
        u = -0.1687 * r - 0.3313 * g + 0.5 * b
        v = 0.5 * r - 0.4187 * g - 0.0813 * b

        # ---- chroma subsampling (even sample replicated into odd) ----------
        if subsample in (1, 2):
            axes = (0, 1) if subsample == 2 else (1,)
            for ax in axes:
                # parity mask hoisted: one iota+compare per axis, shared by U/V
                parity = (jax.lax.broadcasted_iota(jnp.int32, (TH, TW), ax) & 1) == 1
                u = _replicate_even(u, ax, parity)
                v = _replicate_even(v, ax, parity)

        dh = dh_ref[...]                       # (TH, TH) block-diag 8x8 DCT basis
        dw = dw_ref[...]                       # (TW, TW)
        dh_bf = dh.astype(jnp.bfloat16)        # bf16 copies for the inverse pair
        dw_bf = dw.astype(jnp.bfloat16)

        # Expand the 8x8-periodic quant tables to the tile (cheap sublane tiling
        # of a (8,TW) slab; ~n_h vreg copies per table).
        q_l = jnp.tile(q_ref[0:8, :], (n_h, 1))
        q_c = jnp.tile(q_ref[8:16, :], (n_h, 1))
        invq_l = jnp.tile(invq_ref[0:8, :], (n_h, 1))
        invq_c = jnp.tile(invq_ref[8:16, :], (n_h, 1))

        def jpeg_channel(t, q, invq):
            # Forward 2-D block DCT: dh @ t @ dw^T.
            # Kept in f32 operands / f32 accumulation (conscious choice): the
            # result feeds jnp.round, where reduced precision flips quant bins.
            t1 = jnp.dot(dh, t, preferred_element_type=jnp.float32)
            dct = jax.lax.dot_general(t1, dw, (((1,), (1,)), ((), ())),
                                      preferred_element_type=jnp.float32)
            # Quantize (round-half-even, like torch.round) / dequantize via
            # precomputed reciprocal (multiply, not divide).
            deq = jnp.round(dct * invq) * q
            # Inverse 2-D block DCT: dh^T @ deq @ dw with bf16 operands
            # (native MXU dtype) and f32 accumulation.
            t3 = jnp.dot(deq.astype(jnp.bfloat16), dw_bf,
                         preferred_element_type=jnp.float32)
            rec = jax.lax.dot_general(dh_bf, t3.astype(jnp.bfloat16),
                                      (((0,), (0,)), ((), ())),
                                      preferred_element_type=jnp.float32)
            return rec

        yy = jpeg_channel(y, q_l, invq_l)
        uu = jpeg_channel(u, q_c, invq_c)
        vv = jpeg_channel(v, q_c, invq_c)

        # ---- YUV -> RGB, rescale back to [-1, 1] ----------------------------
        rr = yy + 1.40198758 * vv
        gg = yy - 0.344113281 * uu - 0.714103821 * vv
        bb = yy + 1.77197812 * uu
        s = 2.0 / 255.0
        o_ref[0, 0, :, :] = jnp.clip(rr * s - 1.0, -1.0, 1.0)
        o_ref[0, 1, :, :] = jnp.clip(gg * s - 1.0, -1.0, 1.0)
        o_ref[0, 2, :, :] = jnp.clip(bb * s - 1.0, -1.0, 1.0)

    return kernel


class JpegTestPallas:
    """Pallas TPU analogue of `JpegTest` (differentiable-JPEG forward pass)."""

    def __init__(self, Q, subsample=2, tile=128):
        # tile=128 matches the v5e 128x128 MXU exactly and is MXU-time neutral
        # on v6e/v7x (256-deep MXU); it also keeps per-step VMEM small for
        # v7x's 64 MiB and gives more grid steps for pipelining / megacore.
        assert tile % 128 == 0, "tile must be a multiple of 128 (lane width)"
        self.Q = Q
        self.subsample = subsample
        self.scale_factor = 2 - Q * 0.02 if Q >= 50 else 50.0 / Q
        self.tile = tile
        self._fn_cache = {}
        self._tbl_cache = {}

    # ---- host-side constant tables (cached per tile shape) -----------------
    def _tables(self, TH, TW):
        key = (TH, TW)
        if key not in self._tbl_cache:
            coff = _dct_coeff()
            dh = np.kron(np.eye(TH // 8, dtype=np.float32), coff).astype(np.float32)
            dw = np.kron(np.eye(TW // 8, dtype=np.float32), coff).astype(np.float32)
            q, invq = _quant_core_tables(self.scale_factor, TW)
            self._tbl_cache[key] = tuple(jnp.asarray(a) for a in (dh, dw, q, invq))
        return self._tbl_cache[key]

    def _build(self, B, H, W, TH, TW):
        kernel = _make_jpeg_kernel(self.subsample, TH, TW)
        # dh/dw/q/invq are grid-invariant (constant index_map): fetched once.
        in_specs = [
            pl.BlockSpec((1, 3, TH, TW), lambda bi, i, j: (bi, 0, i, j)),
            pl.BlockSpec((TH, TH), lambda bi, i, j: (0, 0)),
            pl.BlockSpec((TW, TW), lambda bi, i, j: (0, 0)),
            pl.BlockSpec((16, TW), lambda bi, i, j: (0, 0)),
            pl.BlockSpec((16, TW), lambda bi, i, j: (0, 0)),
        ]
        return pl.pallas_call(
            kernel,
            out_shape=jax.ShapeDtypeStruct((B, 3, H, W), jnp.float32),
            grid_spec=pltpu.PrefetchScalarGridSpec(
                num_scalar_prefetch=0,
                grid=(B, H // TH, W // TW),
                in_specs=in_specs,
                out_specs=pl.BlockSpec((1, 3, TH, TW), lambda bi, i, j: (bi, 0, i, j)),
            ),
            compiler_params=pltpu.CompilerParams(
                # All grid axes independent; megacore (v7x) needs >= 2 steps to
                # engage — typical watermarking batches/images give many.
                dimension_semantics=("parallel", "parallel", "parallel"),
                # Safe on every generation (<= v7x's 64 MiB physical); the
                # actual per-step footprint is ~2 MiB at TH=TW=128.
                vmem_limit_bytes=32 * 1024 * 1024,
            ),
        )

    def __call__(self, img_wm_device):
        img = jnp.asarray(img_wm_device[0], jnp.float32)   # (B, 3, H, W)
        B, C, H0, W0 = img.shape
        assert C == 3
        T = self.tile

        # H: sublane / JPEG-block granularity (8).  W (lane dim): multiple of
        # 128 so stores are unmasked and the MXU N dimension is fully used.
        H8 = _round_up(H0, 8)
        if H8 <= T:
            H, TH = H8, H8
        else:
            H, TH = _round_up(H0, T), T
        W128 = _round_up(W0, 128)
        if W128 <= T:
            W, TW = W128, W128
        else:
            W, TW = _round_up(W0, T), T

        padded = (H, W) != (H0, W0)
        if padded:
            # zero-padding starts on an 8-aligned boundary for 8-aligned inputs
            # and never leaks into kept pixels; it is cropped again below.
            img = jnp.pad(img, ((0, 0), (0, 0), (0, H - H0), (0, W - W0)))

        dh, dw, q, invq = self._tables(TH, TW)

        key = (B, H, W, TH, TW)
        fn = self._fn_cache.get(key)
        if fn is None:
            fn = self._build(B, H, W, TH, TW)
            self._fn_cache[key] = fn
        out = fn(img, dh, dw, q, invq)

        if padded:
            out = out[:, :, :H0, :W0]
        return out


# --------------------------------------------------------------------------- #
# Validation helpers (plain-JAX mirrors, used only by the self-test in main). #
# --------------------------------------------------------------------------- #
def _reference_forward(img, Q, subsample):
    sf = 2 - Q * 0.02 if Q >= 50 else 50.0 / Q
    img = jnp.asarray(img, jnp.float32)
    _, _, H0, W0 = img.shape
    H, W = _round_up(H0, 8), _round_up(W0, 8)
    x = jnp.pad(img, ((0, 0), (0, 0), (0, H - H0), (0, W - W0)))
    x = (jnp.clip(x, -1.0, 1.0) + 1.0) * (255.0 / 2.0)
    r, g, b = x[:, 0], x[:, 1], x[:, 2]
    y = 0.299 * r + 0.587 * g + 0.114 * b
    u = -0.1687 * r - 0.3313 * g + 0.5 * b
    v = 0.5 * r - 0.4187 * g - 0.0813 * b
    if subsample in (1, 2):
        u = jnp.repeat(u[:, :, ::2], 2, axis=2)
        v = jnp.repeat(v[:, :, ::2], 2, axis=2)
        if subsample == 2:
            u = jnp.repeat(u[:, ::2, :], 2, axis=1)
            v = jnp.repeat(v[:, ::2, :], 2, axis=1)
    coff = _dct_coeff()
    dh = np.kron(np.eye(H // 8, dtype=np.float32), coff).astype(np.float32)
    dw = np.kron(np.eye(W // 8, dtype=np.float32), coff).astype(np.float32)
    lum8 = np.clip(np.round(_LUM_TBL * sf), 1, None).astype(np.float32)
    chr8 = np.clip(np.round(_CHR_TBL * sf), 1, None).astype(np.float32)
    q_l = np.tile(lum8, (H // 8, W // 8))
    q_c = np.tile(chr8, (H // 8, W // 8))
    invq_l = (1.0 / q_l).astype(np.float32)
    invq_c = (1.0 / q_c).astype(np.float32)
    hi = jax.lax.Precision.HIGHEST
    outs = []
    for t, q, invq in ((y, q_l, invq_l), (u, q_c, invq_c), (v, q_c, invq_c)):
        d = jnp.einsum('ij,bjk,lk->bil', dh, t, dw, precision=hi)
        d = jnp.round(d * invq) * q
        outs.append(jnp.einsum('ji,bjk,kl->bil', dh, d, dw, precision=hi))
    yy, uu, vv = outs
    rr = yy + 1.40198758 * vv
    gg = yy - 0.344113281 * uu - 0.714103821 * vv
    bb = yy + 1.77197812 * uu
    out = jnp.stack([rr, gg, bb], axis=1) * (2.0 / 255.0) - 1.0
    return jnp.clip(out, -1.0, 1.0)[:, :, :H0, :W0]


def _replicate_test_kernel(x_ref, o_ref):
    t = x_ref[...]
    t = _replicate_even(t, 0)
    t = _replicate_even(t, 1)
    o_ref[...] = t


def _check_replicate_even():
    """Exact check of the roll+select even->odd replication primitive."""
    x = jnp.arange(16 * 128, dtype=jnp.float32).reshape(16, 128)
    out = pl.pallas_call(
        _replicate_test_kernel,
        out_shape=jax.ShapeDtypeStruct((16, 128), jnp.float32),
    )(x)
    xr = np.asarray(x)
    ref = np.repeat(np.repeat(xr[::2, :], 2, axis=0)[:, ::2], 2, axis=1)
    assert np.array_equal(np.asarray(jax.block_until_ready(out)), ref), \
        "even->odd replication (pltpu.roll direction) mismatch"


if __name__ == "__main__":
    # 1) exact unit check of the subsampling primitive.
    _check_replicate_even()

    key = jax.random.PRNGKey(0)
    k1, k2 = jax.random.split(key)

    # 2) small deterministic RGB batch in [-1, 1], default JpegTest settings
    #    (subsample=2 -> 4:2:0 path).
    x = jax.random.uniform(k1, (2, 3, 16, 16), jnp.float32, minval=-1.0, maxval=1.0)
    jpeg = JpegTestPallas(Q=75, subsample=2)
    out = jax.block_until_ready(jpeg((x,)))
    assert out.shape == (2, 3, 16, 16)
    assert bool(jnp.all(jnp.isfinite(out)))
    assert bool(jnp.all(out >= -1.0)) and bool(jnp.all(out <= 1.0))
    ref = _reference_forward(x, Q=75, subsample=2)
    mad = float(jnp.mean(jnp.abs(out - ref)))
    mxd = float(jnp.max(jnp.abs(out - ref)))
    assert mad < 8e-2, f"kernel deviates from reference: mean|diff|={mad}"
    assert mxd < 5e-1, f"kernel deviates from reference: max|diff|={mxd}"

    # 3) no-subsampling path at a second small shape.
    x2 = jax.random.uniform(k2, (1, 3, 32, 32), jnp.float32, minval=-1.0, maxval=1.0)
    jpeg0 = JpegTestPallas(Q=50, subsample=0)
    out2 = jax.block_until_ready(jpeg0((x2,)))
    assert out2.shape == (1, 3, 32, 32)
    assert bool(jnp.all(jnp.isfinite(out2)))
    ref2 = _reference_forward(x2, Q=50, subsample=0)
    mad2 = float(jnp.mean(jnp.abs(out2 - ref2)))
    mxd2 = float(jnp.max(jnp.abs(out2 - ref2)))
    assert mad2 < 8e-2, f"kernel deviates from reference: mean|diff|={mad2}"
    assert mxd2 < 5e-1, f"kernel deviates from reference: max|diff|={mxd2}"

    print("KERNEL_OK")
</pallas_src>

<mosaic_0001>
module attributes {stable_mosaic.version = 11 : i64} {
  func.func @_replicate_test_kernel(%arg0: memref<16x128xf32, #tpu.memory_space<vmem>>, %arg1: memref<16x128xf32, #tpu.memory_space<vmem>>) attributes {dimension_semantics = [], scalar_prefetch = 0 : i64, scratch_operands = 0 : i64, tpu.core_type = #tpu.core_type<tc>} {
    %c0 = arith.constant 0 : index
    %c0_0 = arith.constant 0 : index
    %0 = vector.load %arg0[%c0, %c0_0] : memref<16x128xf32, #tpu.memory_space<vmem>>, vector<16x128xf32>
    %1 = tpu.iota {dimensions = array<i32: 0>} : vector<16x128xi32>
    %c1_i32 = arith.constant 1 : i32
    %2 = vector.broadcast %c1_i32 : i32 to vector<16x128xi32>
    %3 = arith.andi %1, %2 : vector<16x128xi32>
    %c1_i32_1 = arith.constant 1 : i32
    %4 = vector.broadcast %c1_i32_1 : i32 to vector<16x128xi32>
    %5 = arith.cmpi eq, %3, %4 : vector<16x128xi32>
    %c1_i32_2 = arith.constant 1 : i32
    %6 = tpu.dynamic_rotate %0 by %c1_i32_2 dim 0 : vector<16x128xf32>, i32 -> vector<16x128xf32>
    %7 = arith.select %5, %6, %0 : vector<16x128xi1>, vector<16x128xf32>
    %8 = tpu.iota {dimensions = array<i32: 1>} : vector<16x128xi32>
    %c1_i32_3 = arith.constant 1 : i32
    %9 = vector.broadcast %c1_i32_3 : i32 to vector<16x128xi32>
    %10 = arith.andi %8, %9 : vector<16x128xi32>
    %c1_i32_4 = arith.constant 1 : i32
    %11 = vector.broadcast %c1_i32_4 : i32 to vector<16x128xi32>
    %12 = arith.cmpi eq, %10, %11 : vector<16x128xi32>
    %c1_i32_5 = arith.constant 1 : i32
    %13 = tpu.dynamic_rotate %7 by %c1_i32_5 dim 1 : vector<16x128xf32>, i32 -> vector<16x128xf32>
    %14 = arith.select %12, %13, %7 : vector<16x128xi1>, vector<16x128xf32>
    %c0_6 = arith.constant 0 : index
    %c0_7 = arith.constant 0 : index
    %15 = vector.load %arg1[%c0_6, %c0_7] : memref<16x128xf32, #tpu.memory_space<vmem>>, vector<16x128xf32>
    tpu.vector_store %arg1[%c0_6, %c0_7], %14 {strides = array<i32>} : memref<16x128xf32, #tpu.memory_space<vmem>>, vector<16x128xf32>,
    return
  }
}

</mosaic_0001>

<bundles_post_ra>
// kernel: tpu_custom_call.1
= control target key start
LH: loop header
LB: loop body
LE: loop exit
PB: predicated region body
PF: predicated region fallthrough
CT: control target
= control target key end

     0   :  { %6 = vsyncpa [#allocation3], 0  ;;  %s166_s0 = inlined_call_operand.hbm [shape: f32[16,128], index: 0, kind: input, shape index: {}]   ;;  %s167_s1 = inlined_call_operand.hbm [shape: f32[16,128], index: 1, kind: output, shape index: {}]  }
   0x1   :  { %7 = vsyncpa [#allocation4], 0  ;;  %s121_s6 = smov [#allocation2]   ;;  %s73_s10 = scalar_lea.hbm %s166_s0, 256 }
   0x2   :  { %s13_s7 = sshll.u32 %s121_s6, 4  ;;  %p74_p0 = scmp.ne.s32.totalorder %s166_s0, %s73_s10  ;;  %s14_s7 = int_to_ptr.vmem [resolvable:$true] %s13_s7 }
   0x3   :  { %p77_p1 = scmp.lt.u32.totalorder %s73_s10, %s166_s0 }
   0x5   :  { %p79_p2 = pnand %p77_p1, %p74_p0 }
   0x7   :  { %82 = shalt.err (!%p79_p2)
}
   0x8   :  { %s83_s15 = scalar_lea.vmem %s14_s7, 256  ;;  %p88_p4 = scmp.lt.s32.totalorder %s14_s7, %s14_s7 }
   0x9   :  { %p84_p3 = scmp.ne.s32.totalorder %s14_s7, %s83_s15  ;;  %p89_p5 = scmp.lt.s32.totalorder %s83_s15, %s83_s15 }
   0xb   :  { %p90_p6 = por %p89_p5, %p88_p4 }
   0xd   :  { %p91_p7 = pnand %p90_p6, %p84_p3 }
   0xf   :  { %94 = shalt.err (!%p91_p7)
}
  0x10   :  { %s122_s16 = smov 128   ;;  %s123_s17 = smov 8  }
  0x11   :  { %19 = dma.hbm_to_vmem [thread:$0]  %s166_s0, 256, %s14_s7, [#allocation3], %s122_s16, %s122_s16, %s123_s17  }
  0x12   :  { %117 = dma.done.wait [#allocation3], 256  }
  0x13   :  { %118 = vsyncadd [#allocation3], 4294967040  ;;  %v25_v0 = vlaneseq  ;;  %v23_v5 = vld [vmem:[#allocation2] sm:$0xff]  ;;  %v24_v6 = vld [vmem:[#allocation2 + $0x8] sm:$0xff]  ;;  %s124_s20 = smov 1   ;;  %s125_s0 = smov [#allocation5]  }
  0x14   :  { %v32_v7 = vrot.slane %v23_v5, 7  ;;  %v33_v8 = vrot.slane %v24_v6, 7  ;;  %s56_s21 = sshll.u32 %s125_s0, 4  ;;  %s57_s21 = int_to_ptr.vmem [resolvable:$true] %s56_s21 }
  0x15   :  { %v26_v1 = vshrl.u32 %v25_v0, 7  ;;  %v40_v13 = vand.u32 127, %v25_v0  ;;  %s95_s22 = scalar_lea.vmem %s57_s21, 256  ;;  %p100_p9 = scmp.lt.s32.totalorder %s57_s21, %s57_s21 }
  0x16   :  { %p96_p8 = scmp.ne.s32.totalorder %s57_s21, %s95_s22  ;;  %p101_p10 = scmp.lt.s32.totalorder %s95_s22, %s95_s22 }
  0x17   :  { %v28_v2 = vand.u32 1, %v26_v1  ;;  %v27_v3 = vadd.s32 8, %v26_v1  ;;  %vm34_vm0 = vcmp.lt.s32.totalorder %v26_v1, 1  ;;  %v41_v14 = vand.u32 1, %v40_v13 }
  0x18   :  { %v36_v9 = vsel %vm34_vm0, %v33_v8, %v32_v7  ;;  %v35_v10 = vsel %vm34_vm0, %v32_v7, %v33_v8  ;;  %p102_p11 = por %p101_p10, %p100_p9 }
  0x19   :  { %v29_v4 = vand.u32 1, %v27_v3  ;;  %vm30_vm1 = vcmp.eq.s32.totalorder %v28_v2, 1  ;;  %vm42_vm3 = vcmp.eq.s32.totalorder %v41_v14, 1 }
  0x1a   :  { %v37_v11 = vsel %vm30_vm1, %v36_v9, %v23_v5  ;;  %p103_p12 = pnand %p102_p11, %p96_p8 }
  0x1b   :  { %vm31_vm2 = vcmp.eq.s32.totalorder %v29_v4, 1  ;;  %43 = vrot.lane.b32.xlu0 %v37_v11, %s124_s20 }
  0x1c   :  { %v38_v12 = vsel %vm31_vm2, %v35_v10, %v24_v6 }
  0x1f   :  { %45 = vrot.lane.b32.xlu0 %v38_v12, %s124_s20 }
  0x8d   :  { %v44_v15 = vpop.permute.xlu0 %43 }
  0x8e   :  { %v47_v16 = vsel %vm42_vm3, %v44_v15, %v37_v11 }
  0x8f   :  { %49 = vst [vmem:[#allocation5] sm:$0xff] %v47_v16 }
  0x91   :  { %v46_v17 = vpop.permute.xlu0 %45 }
  0x92   :  { %v48_v18 = vsel %vm42_vm3, %v46_v17, %v38_v12 }
  0x93   :  { %50 = vst [vmem:[#allocation5 + $0x8] sm:$0xff] %v48_v18 }
  0x94   :  { %106 = shalt.err (!%p103_p12)
}
  0x95   :  { %s107_s25 = scalar_lea.hbm %s167_s1, 256 }
  0x96   :  { %p108_p13 = scmp.ne.s32.totalorder %s167_s1, %s107_s25  ;;  %p111_p0 = scmp.lt.u32.totalorder %s107_s25, %s167_s1 }
  0x98   :  { %p113_p1 = pnand %p111_p0, %p108_p13 }
  0x9a   :  { %116 = shalt.err (!%p113_p1)
}
  0x9b   :  { %62 = dma.vmem_to_hbm [thread:$0]  %s57_s21, 256, %s167_s1, [#allocation4], %s122_s16, %s122_s16, %s123_s17  }
  0x9c   :  { %119 = dma.done.wait [#allocation4], 256  }
  0x9d   :  { %120 = vsyncadd [#allocation4], 4294967040 }
  0x9e   :  { %66 = vsyncpa [#allocation3], 1 }
  0x9f   :  { %67 = vsyncpa [#allocation4], 1 }

</bundles_post_ra>
